<compile_context>
chip_gen: v6e
topology: v6e:2x2x1
jax: 0.10.0
libtpu: 0.0.40
codegen_flags: <defaults>
</compile_context>

<pallas_src>
import functools

import jax
import jax.numpy as jnp
from jax import lax
from jax.experimental import pallas as pl
from jax.experimental.pallas import tpu as pltpu


def _weight_norm(v, g):
    """PyTorch weight_norm with dim=0: per-output-channel L2 norm.

    NOTE: no epsilon, matching PyTorch — an all-zero V channel produces NaN.
    """
    norm = jnp.sqrt(jnp.sum(v * v, axis=(1, 2), keepdims=True))
    return g * v / norm


def _tpu_generation_info():
    """Best-effort per-generation tiling knobs (TCs per chip, VMEM budgets)."""
    kind = ""
    try:
        kind = (getattr(jax.devices()[0], "device_kind", "") or "").lower()
    except Exception:
        pass
    if any(t in kind for t in ("v5 lite", "v5e", "v5lite")):
        # 128 MiB physical, 16 MiB default scoped, single TC.
        return dict(tc_per_chip=1, block_budget=40 << 20, vmem_cap=100 << 20)
    if "v6" in kind or "trillium" in kind:
        return dict(tc_per_chip=1, block_budget=48 << 20, vmem_cap=100 << 20)
    if "7" in kind:  # TPU7x: 64 MiB physical VMEM per TC, 2 TCs per chip.
        return dict(tc_per_chip=2, block_budget=20 << 20, vmem_cap=48 << 20)
    if "v2" in kind or "v3" in kind:
        return dict(tc_per_chip=2, block_budget=6 << 20, vmem_cap=14 << 20)
    if "v4" in kind or "v5" in kind:  # v4 / v5p megacore
        return dict(tc_per_chip=2, block_budget=40 << 20, vmem_cap=100 << 20)
    # Unknown: conservative single-TC defaults.
    return dict(tc_per_chip=1, block_budget=24 << 20, vmem_cap=64 << 20)


def _per_lane_bytes(c_in, c_mid, c_out, n_taps):
    """Approx. VMEM bytes per lane of one NB*L grid block (I/O + f32 temps)."""
    c = max(c_mid, c_out)
    return (2 * c_in * 2            # x block, bf16, double-buffered
            + 2 * c_out * 4         # out block, f32, double-buffered
            + 4 * (n_taps * c + 2 * c_mid + 3 * c_out + 16))  # live f32 temporaries


def _pick_batch_block(n, length, *, per_lane, budget, tc_per_chip,
                      target_lanes=4096):
    """Batch elements per grid step: lane-dense blocks sized to the VMEM budget.

    Single-TC chips: maximize NB*L (up to ~target_lanes) even if G == 1.
    Megacore chips : additionally prefer G a multiple of the TC count.
    """
    cands = [nb for nb in range(1, n + 1)
             if n % nb == 0 and ((nb * length) % 128 == 0 or nb == n)]
    fitting = [nb for nb in cands if nb * length * per_lane <= budget] or [min(cands)]

    def choose(cs):
        reach = [nb for nb in cs if nb * length >= target_lanes]
        return min(reach) if reach else max(cs)

    if tc_per_chip >= 2:
        mc = [nb for nb in fitting
              if (n // nb) >= tc_per_chip and (n // nb) % tc_per_chip == 0]
        if mc:
            return choose(mc)
    return choose(fitting)


def _temporal_block_kernel(*refs, shifts, L, NB, mode1, mode2, use_downsample):
    """One batch-block per grid step.

    x_ref  : (Cin, NB*L)   bf16  batch elements concatenated along lanes
    w1_ref : stacked conv1 weight (rows: (T*Cmid, Cin) / contract: (Cmid, T*Cin))
    b1_ref : (Cmid, 1)     f32
    w2_ref : stacked conv2 weight (rows: (T*Cout, Cmid) / contract: (Cout, T*Cmid))
    b2_ref : (Cout, 1)     f32
    wd_ref : (Cout, Cin)   bf16  (only when use_downsample)
    bd_ref : (Cout, 1)     f32   (only when use_downsample)
    o_ref  : (NB, Cout, L) f32   output, already in its final layout
    """
    if use_downsample:
        x_ref, w1_ref, b1_ref, w2_ref, b2_ref, wd_ref, bd_ref, o_ref = refs
    else:
        x_ref, w1_ref, b1_ref, w2_ref, b2_ref, o_ref = refs

    x = x_ref[...]                                   # (Cin, NB*L) bf16
    nbl = x.shape[-1]
    cmid = b1_ref.shape[0]
    cout = o_ref.shape[1]

    # Hoisted causal masks, shared by conv1/conv2.  `& (L-1)` when L is 2^k.
    masks = {}
    nonzero = sorted({s for s in shifts if s > 0})
    if nonzero:
        t = lax.broadcasted_iota(jnp.int32, (1, nbl), 1)
        tmod = (t & (L - 1)) if (L & (L - 1)) == 0 else (t % L)
        for s in nonzero:
            masks[s] = tmod >= s

    def causal_conv(v, w_ref, c_out, mode):
        if mode == "rows":
            # ONE MXU contraction covering all live taps (stacked along the
            # output rows); each tap's f32 slab is causally shifted along time
            # (pltpu.roll on the XLU) and zero-masked per length-L segment.
            p = jnp.dot(w_ref[...], v, preferred_element_type=jnp.float32)
            acc = None
            for j, s in enumerate(shifts):
                slab = p[j * c_out:(j + 1) * c_out, :]
                term = slab if s == 0 else jnp.where(
                    masks[s], pltpu.roll(slab, shift=s, axis=1), 0.0)
                acc = term if acc is None else acc + term
            return acc
        # "contract": taps stacked along the contraction dim — the bf16 input
        # is rolled/masked per tap (half-width data) and the f32 result slab
        # is T× smaller.  Better once channels are wide.
        zero = jnp.zeros((), v.dtype)
        parts = [v if s == 0 else
                 jnp.where(masks[s], pltpu.roll(v, shift=s, axis=1), zero)
                 for s in shifts]
        vs = parts[0] if len(parts) == 1 else jnp.concatenate(parts, axis=0)
        return jnp.dot(w_ref[...], vs, preferred_element_type=jnp.float32)

    # conv1 (causal dilated) + bias + ReLU; dropout1 = identity (eval)
    h = jnp.maximum(causal_conv(x, w1_ref, cmid, mode1) + b1_ref[...], 0.0)

    # conv2 (causal dilated) + bias + ReLU; dropout2 = identity (eval)
    out = jnp.maximum(causal_conv(h.astype(x.dtype), w2_ref, cout, mode2)
                      + b2_ref[...], 0.0)

    # residual path
    if use_downsample:
        res = jnp.dot(wd_ref[...], x, preferred_element_type=jnp.float32) + bd_ref[...]
    else:
        # NOTE: identity residual uses the bf16-rounded x (PyTorch adds f32 x).
        res = x.astype(jnp.float32)

    y = jnp.maximum(out + res, 0.0).astype(o_ref.dtype)     # (Cout, NB*L)
    # Store in the final (N, Cout, L) layout: one lane-aligned, unmasked
    # (Cout, L) slab per batch element — no wrapper-side output transpose.
    for b in range(NB):
        o_ref[b, :, :] = y[:, b * L:(b + 1) * L]


def my_temporal_block(x, params, *, kernel_size, stride, dilation, padding,
                      compute_dtype=jnp.bfloat16, out_dtype=jnp.float32,
                      tap_mode="auto"):
    """x: (N, Cin, L) float32.  Returns (N, Cout, L) `out_dtype` (eval forward)."""
    assert stride == 1, "TCN temporal block uses stride 1"
    assert padding == dilation * (kernel_size - 1), \
        "residual add requires chomped length == input length"

    N, Cin, L = x.shape
    K = kernel_size
    w1 = _weight_norm(params["v1"], params["g1"])       # (Cmid, Cin, K) f32
    w2 = _weight_norm(params["v2"], params["g2"])       # (Cout, Cmid, K) f32
    Cmid, Cout = w1.shape[0], w2.shape[0]
    use_downsample = (Cin != Cout)

    # Live taps only: drop taps whose causal shift falls entirely before t=0.
    live = [k for k in range(K) if dilation * (K - 1 - k) < L]
    shifts = tuple(dilation * (K - 1 - k) for k in live)
    T = len(live)

    def pick_mode(contraction_dim):
        if tap_mode in ("rows", "contract"):
            return tap_mode
        return ("contract"
                if contraction_dim >= 128 and contraction_dim % 16 == 0
                else "rows")

    mode1, mode2 = pick_mode(Cin), pick_mode(Cmid)

    def stack(w, mode):
        taps = [w[:, :, k] for k in live]
        return jnp.concatenate(taps, axis=(1 if mode == "contract" else 0)
                               ).astype(compute_dtype)

    # Lane-dense batch-flattened input (Cin, N*L): one fused transpose+cast.
    x2 = jnp.transpose(x, (1, 0, 2)).reshape(Cin, N * L).astype(compute_dtype)
    w1s, w2s = stack(w1, mode1), stack(w2, mode2)
    b1c = params["b1"].reshape(Cmid, 1).astype(jnp.float32)
    b2c = params["b2"].reshape(Cout, 1).astype(jnp.float32)

    info = _tpu_generation_info()
    per_lane = _per_lane_bytes(Cin, Cmid, Cout, T)
    NB = _pick_batch_block(N, L, per_lane=per_lane, budget=info["block_budget"],
                           tc_per_chip=info["tc_per_chip"])
    G = N // NB
    NBL = NB * L

    # Explicit VMEM budget for the compiler (blocks + f32 temps + weights).
    weight_bytes = (w1s.size + w2s.size) * 2 + (Cmid + Cout) * 4
    est = NBL * per_lane + weight_bytes
    vmem_limit = int(min(info["vmem_cap"], max(32 << 20, 2 * est + (4 << 20))))

    operands = [x2, w1s, b1c, w2s, b2c]
    in_specs = [
        pl.BlockSpec((Cin, NBL), lambda g: (0, g)),
        pl.BlockSpec(w1s.shape, lambda g: (0, 0)),
        pl.BlockSpec((Cmid, 1), lambda g: (0, 0)),
        pl.BlockSpec(w2s.shape, lambda g: (0, 0)),
        pl.BlockSpec((Cout, 1), lambda g: (0, 0)),
    ]
    if use_downsample:
        operands += [params["wd"][:, :, 0].astype(compute_dtype),
                     params["bd"].reshape(Cout, 1).astype(jnp.float32)]
        in_specs += [pl.BlockSpec((Cout, Cin), lambda g: (0, 0)),
                     pl.BlockSpec((Cout, 1), lambda g: (0, 0))]

    kernel = functools.partial(
        _temporal_block_kernel, shifts=shifts, L=L, NB=NB,
        mode1=mode1, mode2=mode2, use_downsample=use_downsample)

    return pl.pallas_call(
        kernel,
        out_shape=jax.ShapeDtypeStruct((N, Cout, L), out_dtype),
        grid_spec=pltpu.PrefetchScalarGridSpec(
            num_scalar_prefetch=0,
            grid=(G,),
            in_specs=in_specs,
            out_specs=pl.BlockSpec((NB, Cout, L), lambda g: (g, 0, 0)),
        ),
        compiler_params=pltpu.CompilerParams(
            dimension_semantics=("parallel",),
            vmem_limit_bytes=vmem_limit),
    )(*operands)


def _reference_forward(x, params, *, kernel_size, stride, dilation, padding,
                       compute_dtype=jnp.float32):
    """Pure-JAX reference mirroring the PyTorch forward (eval mode).

    `compute_dtype` lets the reference round activations/weights at the same
    points as the kernel (bf16 matmul inputs, f32 accumulation).
    """
    cd = compute_dtype

    def conv1d(inp, w, b, pad, dil):
        y = lax.conv_general_dilated(
            inp.astype(cd), w.astype(cd), window_strides=(stride,),
            padding=[(pad, pad)], rhs_dilation=(dil,),
            dimension_numbers=("NCH", "OIH", "NCH"),
            preferred_element_type=jnp.float32)
        return y + b[None, :, None].astype(jnp.float32)

    w1 = _weight_norm(params["v1"], params["g1"])
    w2 = _weight_norm(params["v2"], params["g2"])
    out = conv1d(x, w1, params["b1"], padding, dilation)
    if padding > 0:
        out = out[:, :, :-padding]
    out = jnp.maximum(out, 0.0)
    out = conv1d(out, w2, params["b2"], padding, dilation)
    if padding > 0:
        out = out[:, :, :-padding]
    out = jnp.maximum(out, 0.0)
    Cin, Cout = x.shape[1], w2.shape[0]
    if Cin != Cout:
        res = conv1d(x, params["wd"], params["bd"], 0, 1)
    else:
        res = x.astype(cd).astype(jnp.float32)
    return jnp.maximum(out + res, 0.0)


def _make_params(key, Cin, Cmid, Cout, K):
    ks = jax.random.split(key, 8)
    params = {
        "v1": jax.random.normal(ks[0], (Cmid, Cin, K), jnp.float32) * 0.1,
        "g1": jax.random.uniform(ks[1], (Cmid, 1, 1), jnp.float32, 0.5, 1.5),
        "b1": jax.random.normal(ks[2], (Cmid,), jnp.float32) * 0.1,
        "v2": jax.random.normal(ks[3], (Cout, Cmid, K), jnp.float32) * 0.1,
        "g2": jax.random.uniform(ks[4], (Cout, 1, 1), jnp.float32, 0.5, 1.5),
        "b2": jax.random.normal(ks[5], (Cout,), jnp.float32) * 0.1,
    }
    if Cin != Cout:
        params["wd"] = jax.random.normal(ks[6], (Cout, Cin, 1), jnp.float32) * 0.01
        params["bd"] = jax.random.normal(ks[7], (Cout,), jnp.float32) * 0.01
    return params


def _run_case(key, N, Cin, Cmid, Cout, L, K, dilation, tap_mode="auto"):
    stride = 1
    padding = (K - 1) * dilation
    kp, kx = jax.random.split(key)
    params = _make_params(kp, Cin, Cmid, Cout, K)
    x = jax.random.normal(kx, (N, Cin, L), jnp.float32)

    out = my_temporal_block(x, params, kernel_size=K, stride=stride,
                            dilation=dilation, padding=padding,
                            tap_mode=tap_mode)
    out = jax.block_until_ready(out)
    assert out.shape == (N, Cout, L)

    # Tight check: reference with the same bf16 rounding points / f32 accumulation.
    ref_bf16 = _reference_forward(x, params, kernel_size=K, stride=stride,
                                  dilation=dilation, padding=padding,
                                  compute_dtype=jnp.bfloat16)
    assert jnp.allclose(out, ref_bf16, rtol=1e-2, atol=1e-2), \
        f"bf16-matched max err {jnp.max(jnp.abs(out - ref_bf16))}"

    # Loose sanity check against the full-f32 reference (bf16 boundary rounding).
    ref_f32 = _reference_forward(x, params, kernel_size=K, stride=stride,
                                 dilation=dilation, padding=padding,
                                 compute_dtype=jnp.float32)
    assert jnp.allclose(out, ref_f32, rtol=1e-1, atol=1e-1), \
        f"f32 max err {jnp.max(jnp.abs(out - ref_f32))}"


if __name__ == "__main__":
    k1, k2, k3 = jax.random.split(jax.random.PRNGKey(0), 3)
    # Case 1: n_inputs != n_outputs -> 1x1 downsample residual (rows tap-stacking).
    _run_case(k1, N=2, Cin=4, Cmid=8, Cout=8, L=128, K=3, dilation=2)
    # Case 2: n_inputs == n_outputs -> identity residual (rows tap-stacking).
    _run_case(k2, N=2, Cin=8, Cmid=8, Cout=8, L=128, K=2, dilation=3)
    # Case 3: contraction-dim tap-stacking path, with one dead tap (shift >= L).
    _run_case(k3, N=2, Cin=16, Cmid=16, Cout=16, L=128, K=3, dilation=64,
              tap_mode="contract")
    print("KERNEL_OK")
</pallas_src>

<mosaic_0001>
module attributes {stable_mosaic.version = 11 : i64} {
  func.func @_temporal_block_kernel(%arg0: i32, %arg1: memref<4x256xbf16, #tpu.memory_space<vmem>>, %arg2: memref<24x4xbf16, #tpu.memory_space<vmem>>, %arg3: memref<8x1xf32, #tpu.memory_space<vmem>>, %arg4: memref<24x8xbf16, #tpu.memory_space<vmem>>, %arg5: memref<8x1xf32, #tpu.memory_space<vmem>>, %arg6: memref<8x4xbf16, #tpu.memory_space<vmem>>, %arg7: memref<8x1xf32, #tpu.memory_space<vmem>>, %arg8: memref<2x8x128xf32, #tpu.memory_space<vmem>>) attributes {dimension_semantics = [#tpu.dimension_semantics<parallel>], iteration_bounds = array<i64: 1>, scalar_prefetch = 0 : i64, scratch_operands = 0 : i64, tpu.core_type = #tpu.core_type<tc>, window_params = [{transform_indices = @transform_0, window_bounds = array<i64: 4, 256>}, {pipeline_mode = #tpu.pipeline_mode<synchronous>, transform_indices = @transform_1, window_bounds = array<i64: 24, 4>}, {pipeline_mode = #tpu.pipeline_mode<synchronous>, transform_indices = @transform_2, window_bounds = array<i64: 8, 1>}, {pipeline_mode = #tpu.pipeline_mode<synchronous>, transform_indices = @transform_3, window_bounds = array<i64: 24, 8>}, {pipeline_mode = #tpu.pipeline_mode<synchronous>, transform_indices = @transform_4, window_bounds = array<i64: 8, 1>}, {pipeline_mode = #tpu.pipeline_mode<synchronous>, transform_indices = @transform_5, window_bounds = array<i64: 8, 4>}, {pipeline_mode = #tpu.pipeline_mode<synchronous>, transform_indices = @transform_6, window_bounds = array<i64: 8, 1>}, {transform_indices = @transform_7, window_bounds = array<i64: 2, 8, 128>}]} {
    %c0 = arith.constant 0 : index
    %c0_0 = arith.constant 0 : index
    %0 = vector.load %arg1[%c0, %c0_0] : memref<4x256xbf16, #tpu.memory_space<vmem>>, vector<4x256xbf16>
    %1 = tpu.iota {dimensions = array<i32: 1>} : vector<1x256xi32>
    %c127_i32 = arith.constant 127 : i32
    %2 = vector.broadcast %c127_i32 : i32 to vector<1x256xi32>
    %3 = arith.andi %1, %2 : vector<1x256xi32>
    %c2_i32 = arith.constant 2 : i32
    %4 = vector.broadcast %c2_i32 : i32 to vector<1x256xi32>
    %5 = arith.cmpi sge, %3, %4 : vector<1x256xi32>
    %c4_i32 = arith.constant 4 : i32
    %6 = vector.broadcast %c4_i32 : i32 to vector<1x256xi32>
    %7 = arith.cmpi sge, %3, %6 : vector<1x256xi32>
    %c0_1 = arith.constant 0 : index
    %c0_2 = arith.constant 0 : index
    %8 = vector.load %arg2[%c0_1, %c0_2] : memref<24x4xbf16, #tpu.memory_space<vmem>>, vector<24x4xbf16>
    %cst = arith.constant dense<0.000000e+00> : vector<24x256xf32>
    %9 = tpu.matmul %8, %0, %cst {dimension_numbers = #tpu.dot_dimension_numbers<[1], [0], [0], [1], [0, 0, 1, 1], [], []>} : vector<24x4xbf16>, vector<4x256xbf16>, vector<24x256xf32> -> vector<24x256xf32>
    %10 = vector.extract_strided_slice %9 {offsets = [0, 0], sizes = [8, 256], strides = [1, 1]} : vector<24x256xf32> to vector<8x256xf32>
    %c4_i32_3 = arith.constant 4 : i32
    %11 = tpu.dynamic_rotate %10 by %c4_i32_3 dim 1 : vector<8x256xf32>, i32 -> vector<8x256xf32>
    %cst_4 = arith.constant 0.000000e+00 : f32
    %12 = vector.shape_cast %7 : vector<1x256xi1> to vector<1x256xi1>
    %13 = vector.broadcast %12 : vector<1x256xi1> to vector<8x256xi1>
    %14 = vector.broadcast %cst_4 : f32 to vector<8x256xf32>
    %15 = arith.select %13, %11, %14 : vector<8x256xi1>, vector<8x256xf32>
    %16 = vector.extract_strided_slice %9 {offsets = [8, 0], sizes = [8, 256], strides = [1, 1]} : vector<24x256xf32> to vector<8x256xf32>
    %c2_i32_5 = arith.constant 2 : i32
    %17 = tpu.dynamic_rotate %16 by %c2_i32_5 dim 1 : vector<8x256xf32>, i32 -> vector<8x256xf32>
    %cst_6 = arith.constant 0.000000e+00 : f32
    %18 = vector.shape_cast %5 : vector<1x256xi1> to vector<1x256xi1>
    %19 = vector.broadcast %18 : vector<1x256xi1> to vector<8x256xi1>
    %20 = vector.broadcast %cst_6 : f32 to vector<8x256xf32>
    %21 = arith.select %19, %17, %20 : vector<8x256xi1>, vector<8x256xf32>
    %22 = arith.addf %15, %21 : vector<8x256xf32>
    %23 = vector.extract_strided_slice %9 {offsets = [16, 0], sizes = [8, 256], strides = [1, 1]} : vector<24x256xf32> to vector<8x256xf32>
    %24 = arith.addf %22, %23 : vector<8x256xf32>
    %c0_7 = arith.constant 0 : index
    %c0_8 = arith.constant 0 : index
    %25 = vector.load %arg3[%c0_7, %c0_8] : memref<8x1xf32, #tpu.memory_space<vmem>>, vector<8x1xf32>
    %26 = vector.broadcast %25 : vector<8x1xf32> to vector<8x256xf32>
    %27 = arith.addf %24, %26 : vector<8x256xf32>
    %cst_9 = arith.constant 0.000000e+00 : f32
    %28 = vector.broadcast %cst_9 : f32 to vector<8x256xf32>
    %29 = arith.maximumf %27, %28 : vector<8x256xf32>
    %30 = arith.truncf %29 : vector<8x256xf32> to vector<8x256xbf16>
    %c0_10 = arith.constant 0 : index
    %c0_11 = arith.constant 0 : index
    %31 = vector.load %arg4[%c0_10, %c0_11] : memref<24x8xbf16, #tpu.memory_space<vmem>>, vector<24x8xbf16>
    %cst_12 = arith.constant dense<0.000000e+00> : vector<24x256xf32>
    %32 = tpu.matmul %31, %30, %cst_12 {dimension_numbers = #tpu.dot_dimension_numbers<[1], [0], [0], [1], [0, 0, 1, 1], [], []>} : vector<24x8xbf16>, vector<8x256xbf16>, vector<24x256xf32> -> vector<24x256xf32>
    %33 = vector.extract_strided_slice %32 {offsets = [0, 0], sizes = [8, 256], strides = [1, 1]} : vector<24x256xf32> to vector<8x256xf32>
    %c4_i32_13 = arith.constant 4 : i32
    %34 = tpu.dynamic_rotate %33 by %c4_i32_13 dim 1 : vector<8x256xf32>, i32 -> vector<8x256xf32>
    %cst_14 = arith.constant 0.000000e+00 : f32
    %35 = vector.shape_cast %7 : vector<1x256xi1> to vector<1x256xi1>
    %36 = vector.broadcast %35 : vector<1x256xi1> to vector<8x256xi1>
    %37 = vector.broadcast %cst_14 : f32 to vector<8x256xf32>
    %38 = arith.select %36, %34, %37 : vector<8x256xi1>, vector<8x256xf32>
    %39 = vector.extract_strided_slice %32 {offsets = [8, 0], sizes = [8, 256], strides = [1, 1]} : vector<24x256xf32> to vector<8x256xf32>
    %c2_i32_15 = arith.constant 2 : i32
    %40 = tpu.dynamic_rotate %39 by %c2_i32_15 dim 1 : vector<8x256xf32>, i32 -> vector<8x256xf32>
    %cst_16 = arith.constant 0.000000e+00 : f32
    %41 = vector.shape_cast %5 : vector<1x256xi1> to vector<1x256xi1>
    %42 = vector.broadcast %41 : vector<1x256xi1> to vector<8x256xi1>
    %43 = vector.broadcast %cst_16 : f32 to vector<8x256xf32>
    %44 = arith.select %42, %40, %43 : vector<8x256xi1>, vector<8x256xf32>
    %45 = arith.addf %38, %44 : vector<8x256xf32>
    %46 = vector.extract_strided_slice %32 {offsets = [16, 0], sizes = [8, 256], strides = [1, 1]} : vector<24x256xf32> to vector<8x256xf32>
    %47 = arith.addf %45, %46 : vector<8x256xf32>
    %c0_17 = arith.constant 0 : index
    %c0_18 = arith.constant 0 : index
    %48 = vector.load %arg5[%c0_17, %c0_18] : memref<8x1xf32, #tpu.memory_space<vmem>>, vector<8x1xf32>
    %49 = vector.broadcast %48 : vector<8x1xf32> to vector<8x256xf32>
    %50 = arith.addf %47, %49 : vector<8x256xf32>
    %cst_19 = arith.constant 0.000000e+00 : f32
    %51 = vector.broadcast %cst_19 : f32 to vector<8x256xf32>
    %52 = arith.maximumf %50, %51 : vector<8x256xf32>
    %c0_20 = arith.constant 0 : index
    %c0_21 = arith.constant 0 : index
    %53 = vector.load %arg6[%c0_20, %c0_21] : memref<8x4xbf16, #tpu.memory_space<vmem>>, vector<8x4xbf16>
    %cst_22 = arith.constant dense<0.000000e+00> : vector<8x256xf32>
    %54 = tpu.matmul %53, %0, %cst_22 {dimension_numbers = #tpu.dot_dimension_numbers<[1], [0], [0], [1], [0, 0, 1, 1], [], []>} : vector<8x4xbf16>, vector<4x256xbf16>, vector<8x256xf32> -> vector<8x256xf32>
    %c0_23 = arith.constant 0 : index
    %c0_24 = arith.constant 0 : index
    %55 = vector.load %arg7[%c0_23, %c0_24] : memref<8x1xf32, #tpu.memory_space<vmem>>, vector<8x1xf32>
    %56 = vector.broadcast %55 : vector<8x1xf32> to vector<8x256xf32>
    %57 = arith.addf %54, %56 : vector<8x256xf32>
    %58 = arith.addf %52, %57 : vector<8x256xf32>
    %cst_25 = arith.constant 0.000000e+00 : f32
    %59 = vector.broadcast %cst_25 : f32 to vector<8x256xf32>
    %60 = arith.maximumf %58, %59 : vector<8x256xf32>
    %61 = vector.extract_strided_slice %60 {offsets = [0, 0], sizes = [8, 128], strides = [1, 1]} : vector<8x256xf32> to vector<8x128xf32>
    %c0_26 = arith.constant 0 : index
    %c0_27 = arith.constant 0 : index
    %c0_28 = arith.constant 0 : index
    %62 = vector.load %arg8[%c0_26, %c0_27, %c0_28] : memref<2x8x128xf32, #tpu.memory_space<vmem>>, vector<1x8x128xf32>
    %63 = vector.shape_cast %62 : vector<1x8x128xf32> to vector<8x128xf32>
    %64 = vector.shape_cast %61 : vector<8x128xf32> to vector<1x8x128xf32>
    tpu.vector_store %arg8[%c0_26, %c0_27, %c0_28], %64 {strides = array<i32>} : memref<2x8x128xf32, #tpu.memory_space<vmem>>, vector<1x8x128xf32>,
    %65 = vector.extract_strided_slice %60 {offsets = [0, 128], sizes = [8, 128], strides = [1, 1]} : vector<8x256xf32> to vector<8x128xf32>
    %c1 = arith.constant 1 : index
    %c0_29 = arith.constant 0 : index
    %c0_30 = arith.constant 0 : index
    %66 = vector.load %arg8[%c1, %c0_29, %c0_30] : memref<2x8x128xf32, #tpu.memory_space<vmem>>, vector<1x8x128xf32>
    %67 = vector.shape_cast %66 : vector<1x8x128xf32> to vector<8x128xf32>
    %68 = vector.shape_cast %65 : vector<8x128xf32> to vector<1x8x128xf32>
    tpu.vector_store %arg8[%c1, %c0_29, %c0_30], %68 {strides = array<i32>} : memref<2x8x128xf32, #tpu.memory_space<vmem>>, vector<1x8x128xf32>,
    return
  }
  func.func @transform_0(%arg0: i32) -> (i32, i32) {
    %c0_i32 = arith.constant 0 : i32
    %c0_i32_0 = arith.constant 0 : i32
    return %c0_i32, %arg0 : i32, i32
  }
  func.func @transform_1(%arg0: i32) -> (i32, i32) {
    %c0_i32 = arith.constant 0 : i32
    %c0_i32_0 = arith.constant 0 : i32
    %c0_i32_1 = arith.constant 0 : i32
    return %c0_i32, %c0_i32_0 : i32, i32
  }
  func.func @transform_2(%arg0: i32) -> (i32, i32) {
    %c0_i32 = arith.constant 0 : i32
    %c0_i32_0 = arith.constant 0 : i32
    %c0_i32_1 = arith.constant 0 : i32
    return %c0_i32, %c0_i32_0 : i32, i32
  }
  func.func @transform_3(%arg0: i32) -> (i32, i32) {
    %c0_i32 = arith.constant 0 : i32
    %c0_i32_0 = arith.constant 0 : i32
    %c0_i32_1 = arith.constant 0 : i32
    return %c0_i32, %c0_i32_0 : i32, i32
  }
  func.func @transform_4(%arg0: i32) -> (i32, i32) {
    %c0_i32 = arith.constant 0 : i32
    %c0_i32_0 = arith.constant 0 : i32
    %c0_i32_1 = arith.constant 0 : i32
    return %c0_i32, %c0_i32_0 : i32, i32
  }
  func.func @transform_5(%arg0: i32) -> (i32, i32) {
    %c0_i32 = arith.constant 0 : i32
    %c0_i32_0 = arith.constant 0 : i32
    %c0_i32_1 = arith.constant 0 : i32
    return %c0_i32, %c0_i32_0 : i32, i32
  }
  func.func @transform_6(%arg0: i32) -> (i32, i32) {
    %c0_i32 = arith.constant 0 : i32
    %c0_i32_0 = arith.constant 0 : i32
    %c0_i32_1 = arith.constant 0 : i32
    return %c0_i32, %c0_i32_0 : i32, i32
  }
  func.func @transform_7(%arg0: i32) -> (i32, i32, i32) {
    %c0_i32 = arith.constant 0 : i32
    %c0_i32_0 = arith.constant 0 : i32
    %c0_i32_1 = arith.constant 0 : i32
    return %arg0, %c0_i32, %c0_i32_0 : i32, i32, i32
  }
}

</mosaic_0001>

<bundles_post_ra>
// kernel: tpu_custom_call.1
= control target key start
LH: loop header
LB: loop body
LE: loop exit
PB: predicated region body
PF: predicated region fallthrough
CT: control target
= control target key end

     0   :  { %vm65_vm0 = vcmask 1041408   ;;  %v392_v3 = vmov 0   ;;  %vm58_vm1 = vcmask 31744   ;;  %s533_s0 = inlined_call_operand.vmem [shape: bf16[4,256], index: 0, kind: input, shape index: {}]   ;;  %s534_s1 = inlined_call_operand.vmem [shape: bf16[24,4], index: 1, kind: input, shape index: {}]   ;;  %s535_s2 = inlined_call_operand.vmem [shape: f32[8,1], index: 2, kind: input, shape index: {}]   ;;  %s536_s3 = inlined_call_operand.vmem [shape: bf16[24,8], index: 3, kind: input, shape index: {}]   ;;  %s537_s4 = inlined_call_operand.vmem [shape: f32[8,1], index: 4, kind: input, shape index: {}]   ;;  %s538_s5 = inlined_call_operand.vmem [shape: bf16[8,4], index: 5, kind: input, shape index: {}]   ;;  %s539_s6 = inlined_call_operand.vmem [shape: f32[8,1], index: 6, kind: input, shape index: {}]   ;;  %s540_s7 = inlined_call_operand.hbm [shape: f32[2,8,128], index: 7, kind: output, shape index: {}]  }
   0x1   :  { %v347_v0 = vld.sshfl [vmem:[%s533_s0] sm:$0x33 pattern:$0x76325410]  ;;  %104 = vmatprep.mubr.bf16.mxu0 %v392_v3  ;;  %364 = vset.pattern.permute.xlu0 %v392_v3 }
   0x2   :  { %v57_v1 = vcombine.high %v347_v0, %v347_v0  ;;  %v67_v2 = vsel %vm65_vm0, %v347_v0, 0  ;;  %v366_v4 = vld [vmem:[%s534_s1] sm:$0xff]   ;;  %222 = vmatprep.mubr.bf16.mxu1 %v392_v3  ;;  %365 = vset.pattern.permute.xlu1 %v392_v3 }
   0x4   :  { %348 = vmatprep.subr.msk.bf16.mxu0 %vm65_vm0, %v57_v1 }
   0x5   :  { %87 = vmatpush1.bf16.msra.mxu0 %v67_v2 }
   0x6   :  { %12 = vsyncpa [#allocation3], 0  ;;  %356 = vmatprep.subr.msk.bf16.mxu0 %vm65_vm0, %v57_v1  ;;  %v367_v5 = vld [vmem:[%s534_s1 + $0x8] ss:$0 sps:$4 sm:$0xff]   ;;  %s393_s29 = smov 4   ;;  %s394_s30 = smov 2   ;;  %v29_v16 = vlaneseq }
   0x7   :  { %v153_v10 = vld [vmem:[%s535_s2] sm:$0xff]  ;;  %vm183_vm8 = vcmask 1043456   ;;  %vm176_vm9 = vcmask 64512   ;;  %v369_v47 = vld [vmem:[%s536_s3 + $0x8] ss:$0 sps:$4 sm:$0xff]  }
   0x8   :  { %349 = vmatmul.mubr.msk.bf16.vlgmr.msra.gmra.mxu0 %vm58_vm1, %v366_v4  ;;  %v271_v15 = vld [vmem:[%s538_s5] sm:$0xf]  ;;  %v466_v17 = vand.u32 127, %v29_v16 }
   0x9   :  { %114 = vmatprep.mubr.bf16.mxu0 %v392_v3  ;;  %296 = vmatpush1.bf16.msra.mxu0 %v67_v2  ;;  %v368_v46 = vld [vmem:[%s536_s3] sm:$0xff]  }
   0xa   :  { %v31_v19 = vadd.s32 128, %v466_v17  ;;  %vm127_vm2 = vcmp.lt.s32.totalorder %v466_v17, 4  ;;  %vm140_vm3 = vcmp.lt.s32.totalorder %v466_v17, 2  ;;  %vm34_vm4 = vcmp.ge.s32.totalorder %v466_v17, 2  ;;  %v261_v55 = vld [vmem:[%s537_s4] sm:$0xff]  ;;  %s395_s4 = smov [#allocation2]  }
   0xb   :  { %vm36_vm6 = vcmp.ge.s32.totalorder %v466_v17, 4  ;;  %v272_v58 = vld [vmem:[%s539_s6] sm:$0xff]  ;;  %s334_s6 = sshll.u32 %s395_s4, 4  ;;  %s335_s6 = int_to_ptr.vmem [resolvable:$true] %s334_s6 }
   0xc   :  { %v33_v20 = vand.u32 127, %v31_v19  ;;  %s370_s16 = scalar_lea.vmem %s335_s6, 256  ;;  %p375_p1 = scmp.lt.s32.totalorder %s335_s6, %s335_s6 }
   0xd   :  { %p371_p0 = scmp.ne.s32.totalorder %s335_s6, %s370_s16  ;;  %p376_p2 = scmp.lt.s32.totalorder %s370_s16, %s370_s16 }
   0xe   :  { %vm472_vm5 = vcmp.ge.s32.totalorder %v33_v20, 2  ;;  %vm477_vm7 = vcmp.ge.s32.totalorder %v33_v20, 4 }
   0xf   :  { %p377_p3 = por %p376_p2, %p375_p1 }
  0x10   :  { %350 = vmatmul.mubr.msk.bf16.gmra.mxu0 %vm58_vm1, %v367_v5 }
  0x11   :  { %313 = vmatprep.mubr.bf16.mxu0 %v392_v3  ;;  %p378_p4 = pnand %p377_p3, %p371_p0 }
  0x18   :  { %357 = vmatmul.mubr.msk.bf16.vlgmr.msra.gmra.mxu0 %vm58_vm1, %v271_v15 }
  0xc8   :  { %v106_v6 = vpop.f32.mrf.mxu0 }
  0xc9   :  { %123 = vrot.lane.b32.xlu0 %v106_v6, %s393_s29 }
  0xca   :  { %v108_v7 = vpop.f32.mrf.mxu0 }
  0xcc   :  { %v110_v8 = vpop.f32.mrf.mxu0 }
  0xcd   :  { %125 = vrot.lane.b32.xlu0 %v108_v7, %s393_s29  ;;  %136 = vrot.lane.b32.xlu1 %v110_v8, %s394_s30 }
  0xce   :  { %v112_v9 = vpop.f32.mrf.mxu0 }
  0xd0   :  { %v116_v11 = vpop.f32.mrf.mxu0 }
  0xd1   :  { %156 = vperm.xlu0 %364, %v153_v10   ;;  %138 = vrot.lane.b32.xlu1 %v112_v9, %s394_s30 }
  0xd2   :  { %v118_v12 = vpop.f32.mrf.mxu0 }
  0xd4   :  { %v120_v13 = vpop.f32.mrf.mxu0 }
  0xd6   :  { %v121_v14 = vpop.f32.mrf.mxu0 }
  0xd8   :  { %v315_v49 = vpop.f32.mrf.mxu0 }
  0xda   :  { %v317_v51 = vpop.f32.mrf.mxu0 }
  0xdc   :  { %v319_v53 = vpop.f32.mrf.mxu0 }
  0xde   :  { %v320_v56 = vpop.f32.mrf.mxu0 }
 0x13b   :  { %v124_v18 = vpop.permute.xlu0 %123 }
 0x13f   :  { %v137_v21 = vpop.permute.xlu1 %136  ;;  %v126_v22 = vpop.permute.xlu0 %125 }
 0x140   :  { %v128_v25 = vsel %vm127_vm2, %v124_v18, %v126_v22  ;;  %v129_v26 = vsel %vm127_vm2, %v126_v22, %v124_v18 }
 0x141   :  { %v134_v32 = vsel %vm36_vm6, %v129_v26, 0.0  ;;  %v135_v33 = vsel %vm477_vm7, %v128_v25, 0.0 }
 0x143   :  { %v139_v27 = vpop.permute.xlu1 %138 }
 0x144   :  { %v141_v28 = vsel %vm140_vm3, %v137_v21, %v139_v27  ;;  %v142_v29 = vsel %vm140_vm3, %v139_v27, %v137_v21 }
 0x145   :  { %v147_v30 = vsel %vm34_vm4, %v142_v29, 0.0  ;;  %v148_v31 = vsel %vm472_vm5, %v141_v28, 0.0 }
 0x146   :  { %v149_v34 = vadd.f32 %v147_v30, %v134_v32  ;;  %v150_v35 = vadd.f32 %v148_v31, %v135_v33 }
 0x148   :  { %v152_v36 = vadd.f32 %v150_v35, %v118_v12  ;;  %v151_v37 = vadd.f32 %v149_v34, %v116_v11 }
 0x14c   :  { %v157_v38 = vpop.permute.xlu0 %156 }
 0x14d   :  { %v159_v39 = vadd.f32 %v157_v38, %v151_v37  ;;  %v160_v40 = vadd.f32 %v157_v38, %v152_v36 }
 0x14f   :  { %v161_v41 = vmax.f32 %v159_v39, 0.0  ;;  %v162_v42 = vmax.f32 %v160_v40, 0.0 }
 0x151   :  { %v164_v43 = vpack.c.bf16 %v162_v42, %v162_v42  ;;  %v163_v44 = vpack.c.bf16 %v161_v41, %v161_v41 }
 0x153   :  { %353 = vmatprep.subr.msk.bf16.mxu1 %vm183_vm8, %v164_v43  ;;  %v185_v45 = vsel %vm183_vm8, %v163_v44, 0 }
 0x154   :  { %205 = vmatpush1.bf16.msra.mxu1 %v185_v45 }
 0x157   :  { %354 = vmatmul.mubr.msk.bf16.vlgmr.msra.gmra.mxu1 %vm176_vm9, %v368_v46 }
 0x158   :  { %232 = vmatprep.mubr.bf16.mxu1 %v392_v3 }
 0x15f   :  { %355 = vmatmul.mubr.msk.bf16.gmra.mxu1 %vm176_vm9, %v369_v47 }
 0x217   :  { %v224_v48 = vpop.f32.mrf.mxu1 }
 0x218   :  { %241 = vrot.lane.b32.xlu1 %v224_v48, %s393_s29 }
 0x219   :  { %v226_v50 = vpop.f32.mrf.mxu1 }
 0x21b   :  { %v228_v52 = vpop.f32.mrf.mxu1 }
 0x21c   :  { %243 = vrot.lane.b32.xlu1 %v226_v50, %s393_s29  ;;  %249 = vrot.lane.b32.xlu0 %v228_v52, %s394_s30 }
 0x21d   :  { %v230_v54 = vpop.f32.mrf.mxu1 }
 0x21f   :  { %v234_v57 = vpop.f32.mrf.mxu1 }
 0x220   :  { %264 = vperm.xlu0 %364, %v261_v55   ;;  %251 = vrot.lane.b32.xlu1 %v230_v54, %s394_s30 }
 0x221   :  { %v236_v59 = vpop.f32.mrf.mxu1 }
 0x223   :  { %v238_v60 = vpop.f32.mrf.mxu1 }
 0x224   :  { %275 = vperm.xlu1 %365, %v272_v58  }
 0x225   :  { %v239_v61 = vpop.f32.mrf.mxu1 }
 0x28a   :  { %v242_v62 = vpop.permute.xlu1 %241 }
 0x28e   :  { %v244_v63 = vpop.permute.xlu1 %243  ;;  %v250_v2 = vpop.permute.xlu0 %249 }
 0x28f   :  { %v245_v0 = vsel %vm127_vm2, %v242_v62, %v244_v63  ;;  %v246_v1 = vsel %vm127_vm2, %v244_v63, %v242_v62 }
 0x290   :  { %v247_v8 = vsel %vm36_vm6, %v246_v1, 0.0  ;;  %v248_v9 = vsel %vm477_vm7, %v245_v0, 0.0 }
 0x292   :  { %v252_v3 = vpop.permute.xlu1 %251 }
 0x293   :  { %v253_v4 = vsel %vm140_vm3, %v250_v2, %v252_v3  ;;  %v254_v5 = vsel %vm140_vm3, %v252_v3, %v250_v2 }
 0x294   :  { %v255_v6 = vsel %vm34_vm4, %v254_v5, 0.0  ;;  %v256_v7 = vsel %vm472_vm5, %v253_v4, 0.0 }
 0x295   :  { %v257_v10 = vadd.f32 %v255_v6, %v247_v8  ;;  %v258_v11 = vadd.f32 %v256_v7, %v248_v9 }
 0x297   :  { %v259_v12 = vadd.f32 %v257_v10, %v234_v57  ;;  %v260_v13 = vadd.f32 %v258_v11, %v236_v59 }
 0x29b   :  { %v265_v14 = vpop.permute.xlu0 %264 }
 0x29c   :  { %v267_v15 = vadd.f32 %v265_v14, %v259_v12  ;;  %v268_v16 = vadd.f32 %v265_v14, %v260_v13 }
 0x29e   :  { %v269_v19 = vmax.f32 %v267_v15, 0.0  ;;  %v270_v20 = vmax.f32 %v268_v16, 0.0 }
 0x29f   :  { %v276_v18 = vpop.permute.xlu1 %275 }
 0x2a0   :  { %v316_v21 = vadd.f32 %v315_v49, %v276_v18  ;;  %v318_v22 = vadd.f32 %v317_v51, %v276_v18 }
 0x2a2   :  { %v322_v23 = vadd.f32 %v316_v21, %v269_v19  ;;  %v323_v17 = vadd.f32 %v318_v22, %v270_v20 }
 0x2a4   :  { %v324_v25 = vmax.f32 %v322_v23, 0.0  ;;  %v325_v24 = vmax.f32 %v323_v17, 0.0 }
 0x2a6   :  { %326 = vst [vmem:[#allocation2] sm:$0xff] %v324_v25  ;;  %328 = vst [vmem:[#allocation2 + $0x8] sm:$0xff] %v325_v24 }
 0x2a7   :  { %381 = shalt.err (!%p378_p4)
}
 0x2a8   :  { %s396_s17 = smov 128   ;;  %s397_s18 = smov 8  }
 0x2a9   :  { %340 = dma.vmem_to_hbm [thread:$0]  %s335_s6, 256, %s540_s7, [#allocation3], %s396_s17, %s396_s17, %s397_s18  }
 0x2aa   :  { %390 = dma.done.wait [#allocation3], 256  }
 0x2ab   :  { %391 = vsyncadd [#allocation3], 4294967040 }
 0x2ac   :  { %344 = vsyncpa [#allocation3], 1 }

</bundles_post_ra>
